<compile_context>
chip_gen: v6e
topology: v6e:2x2x1
jax: 0.10.0
libtpu: 0.0.40
codegen_flags: <defaults>
</compile_context>

<pallas_src>
import functools

import jax
import jax.numpy as jnp
from jax.experimental import pallas as pl
from jax.experimental.pallas import tpu as pltpu

EPS = 1e-6


def _round_up(x, m):
    return ((x + m - 1) // m) * m


def _vmem_capacity_bytes():
    try:
        return int(pltpu.get_tpu_info().vmem_capacity_bytes)
    except Exception:
        return 64 << 20  # conservative: v7x per-TensorCore VMEM


def sublayer_connection_kernel(x_ref, gamma_ref, beta_ref, w_ref, b_ref,
                               o_ref, normed_ref, *, d_real, tn, n_cols):
    j = pl.program_id(1)

    def compute_normed():
        # Single-pass LayerNorm statistics (sum / sum-of-squares), torch-style:
        # unbiased variance (d-1), eps added to std (NOT inside the sqrt).
        x = x_ref[...].astype(jnp.float32)                       # (TM, Dp)
        s1 = jnp.sum(x, axis=-1, keepdims=True)                  # (TM, 1)
        s2 = jnp.sum(x * x, axis=-1, keepdims=True)              # (TM, 1)
        mean = s1 * (1.0 / d_real)
        var = jnp.maximum(s2 - s1 * mean, 0.0) * (1.0 / max(d_real - 1, 1))
        inv = pl.reciprocal(jnp.sqrt(var) + EPS, approx=True)    # EUP, ~free slot
        gamma = gamma_ref[...].astype(jnp.float32)               # (1, Dp)
        beta = beta_ref[...].astype(jnp.float32)                 # (1, Dp)
        normed = (x - mean) * (gamma * inv) + beta
        normed_ref[...] = normed.astype(jnp.bfloat16)            # bf16 MXU feed

    if n_cols == 1:
        compute_normed()
        x_res = x_ref[...].astype(jnp.float32)                   # (TM, TN==Dp)
        bias = b_ref[...].astype(jnp.float32)                    # (1, TN)
    else:
        pl.when(j == 0)(compute_normed)                          # once per row tile
        col0 = pl.multiple_of(j * tn, tn)                        # 128-aligned
        x_res = x_ref[:, pl.ds(col0, tn)].astype(jnp.float32)    # (TM, TN)
        bias = b_ref[:, pl.ds(col0, tn)].astype(jnp.float32)     # (1, TN)

    # Sublayer: Linear(d_model -> d_model) column block; bf16 operands, f32 accum.
    y = jnp.dot(normed_ref[...], w_ref[...], preferred_element_type=jnp.float32)

    # Dropout in eval mode == identity; residual add.
    o_ref[...] = (x_res + y + bias).astype(o_ref.dtype)


@functools.partial(jax.jit, static_argnames=("tm",))
def sublayer_connection(x, gamma, beta, w, b, *, tm=None):
    """x: (B, S, D). Returns x + Linear(LayerNorm(x)) (dropout in eval mode)."""
    B, S, D = x.shape
    M = B * S
    xbytes = jnp.dtype(x.dtype).itemsize

    # --- pad D to a multiple of 128 (lane-dense stores, full-width MXU operands) ---
    D_pad = max(128, _round_up(D, 128))
    x2 = x.reshape(M, D)

    if w.dtype != jnp.bfloat16:
        w = w.astype(jnp.bfloat16)       # ideally already bf16 (cast once at setup)

    gamma2 = gamma.reshape(1, D).astype(jnp.float32)
    beta2 = beta.reshape(1, D).astype(jnp.float32)
    b2 = b.reshape(1, D).astype(jnp.float32)
    if D_pad != D:
        pad = D_pad - D
        x2 = jnp.pad(x2, ((0, 0), (0, pad)))
        gamma2 = jnp.pad(gamma2, ((0, 0), (0, pad)))   # zero-padded lanes stay 0
        beta2 = jnp.pad(beta2, ((0, 0), (0, pad)))
        b2 = jnp.pad(b2, ((0, 0), (0, pad)))
        w = jnp.pad(w, ((0, pad), (0, pad)))

    # --- per-generation VMEM budgeting ---
    vmem_cap = _vmem_capacity_bytes()
    budget = min(int(vmem_cap * 0.75), 96 << 20)

    w_bytes = 2 * D_pad * D_pad                         # bf16 weight
    if w_bytes <= budget // 3:
        tn = D_pad                                      # W fully VMEM-resident (1 copy)
    else:
        tn = 128                                        # stream W column blocks
        for cand in (2048, 1024, 512, 256):
            if D_pad % cand == 0 and 4 * D_pad * cand <= budget // 3:
                tn = cand
                break
    n_cols = D_pad // tn
    w_resident = (n_cols == 1)
    w_vmem = w_bytes if w_resident else 4 * D_pad * tn  # 1 copy vs 2 column buffers

    # Per-row VMEM: double-buffered x + out blocks, bf16 normed scratch, f32 temps headroom.
    per_row = (2 * D_pad * xbytes + 2 * tn * xbytes + D_pad * 2 + 3 * D_pad * 4)
    param_bytes = 4 * D_pad * 4
    avail = max(budget - w_vmem - param_bytes, per_row * 8)

    tm_eff = 512 if tm is None else tm
    tm_eff = min(tm_eff, max(8, (avail // per_row) // 8 * 8))
    if M > 8:
        # guarantee >=2 row tiles so both TensorCores (megacore) get work
        tm_eff = min(tm_eff, _round_up((M + 1) // 2, 8))
    tm_eff = max(8, (tm_eff // 8) * 8)

    M_pad = _round_up(M, tm_eff)
    if M_pad != M:
        x2 = jnp.pad(x2, ((0, M_pad - M), (0, 0)))
    n_rows = M_pad // tm_eff

    est = w_vmem + param_bytes + per_row * tm_eff
    vmem_limit = int(min(vmem_cap, max(est + (8 << 20), 32 << 20)))

    kernel = functools.partial(sublayer_connection_kernel,
                               d_real=D, tn=tn, n_cols=n_cols)

    # Grid-invariant small params are whole-array VMEM operands (single copy, no
    # double buffering).  W is resident the same way when it fits, else streamed.
    if w_resident:
        w_spec = pl.BlockSpec(memory_space=pltpu.MemorySpace.VMEM)
    else:
        w_spec = pl.BlockSpec((D_pad, tn), lambda i, j: (0, j))

    in_specs = [
        pl.BlockSpec((tm_eff, D_pad), lambda i, j: (i, 0)),            # x row tile
        pl.BlockSpec(memory_space=pltpu.MemorySpace.VMEM),             # gamma
        pl.BlockSpec(memory_space=pltpu.MemorySpace.VMEM),             # beta
        w_spec,                                                        # W (bf16)
        pl.BlockSpec(memory_space=pltpu.MemorySpace.VMEM),             # bias
    ]
    out_specs = pl.BlockSpec((tm_eff, tn), lambda i, j: (i, j))

    cost = pl.CostEstimate(
        flops=2 * M_pad * D_pad * D_pad + 10 * M_pad * D_pad,
        transcendentals=2 * M_pad,
        bytes_accessed=(2 * M_pad * D_pad * xbytes
                        + (1 if w_resident else n_rows) * w_bytes
                        + 3 * D_pad * 4),
    )

    out = pl.pallas_call(
        kernel,
        out_shape=jax.ShapeDtypeStruct((M_pad, D_pad), x.dtype),
        grid_spec=pltpu.PrefetchScalarGridSpec(
            num_scalar_prefetch=0,
            grid=(n_rows, n_cols),
            in_specs=in_specs,
            out_specs=out_specs,
            scratch_shapes=[pltpu.VMEM((tm_eff, D_pad), jnp.bfloat16)],
        ),
        compiler_params=pltpu.CompilerParams(
            dimension_semantics=("parallel", "arbitrary"),
            vmem_limit_bytes=vmem_limit,
        ),
        cost_estimate=cost,
    )(x2, gamma2, beta2, w, b2)

    out = out[:M, :D]
    return out.reshape(B, S, D)


def reference(x, gamma, beta, w, b):
    mean = jnp.mean(x, axis=-1, keepdims=True)
    centered = x - mean
    var = jnp.sum(centered * centered, axis=-1, keepdims=True) / (x.shape[-1] - 1)
    std = jnp.sqrt(var)
    normed = gamma * centered / (std + EPS) + beta
    y = jnp.einsum("bsd,de->bse", normed, w) + b
    return x + y


if __name__ == "__main__":
    key = jax.random.PRNGKey(0)
    B, S, D = 2, 8, 32  # batch=2, seq=8, d_model=32

    kx, kw = jax.random.split(key)
    x = jax.random.normal(kx, (B, S, D), dtype=jnp.float32)

    # Parameters (LayerNorm: gamma=1, beta=0; Linear: small random W, zero bias).
    gamma = jnp.ones((D,), dtype=jnp.float32)
    beta = jnp.zeros((D,), dtype=jnp.float32)
    w = jax.random.normal(kw, (D, D), dtype=jnp.float32) * (1.0 / jnp.sqrt(D))
    b = jnp.zeros((D,), dtype=jnp.float32)

    # Cast the weight to bf16 once at setup time (not per call under jit).
    w_bf16 = w.astype(jnp.bfloat16)

    out = sublayer_connection(x, gamma, beta, w_bf16, b)
    out = jax.block_until_ready(out)

    ref = reference(x, gamma, beta, w, b)
    assert out.shape == (B, S, D)
    # Loosened tolerance: bf16 MXU feed + approx reciprocal (intentional perf choices).
    assert jnp.allclose(out, ref, atol=3e-2, rtol=3e-2), "mismatch vs reference"

    print("KERNEL_OK")
</pallas_src>

<mosaic_0001>
module attributes {stable_mosaic.version = 11 : i64} {
  func.func @sublayer_connection_kernel(%arg0: i32, %arg1: i32, %arg2: memref<8x128xf32, #tpu.memory_space<vmem>>, %arg3: memref<1x128xf32, #tpu.memory_space<vmem>>, %arg4: memref<1x128xf32, #tpu.memory_space<vmem>>, %arg5: memref<128x128xbf16, #tpu.memory_space<vmem>>, %arg6: memref<1x128xf32, #tpu.memory_space<vmem>>, %arg7: memref<8x128xf32, #tpu.memory_space<vmem>>, %arg8: memref<8x128xbf16, #tpu.memory_space<vmem>>) attributes {dimension_semantics = [#tpu.dimension_semantics<parallel>, #tpu.dimension_semantics<arbitrary>], iteration_bounds = array<i64: 2, 1>, scalar_prefetch = 0 : i64, scratch_operands = 1 : i64, tpu.core_type = #tpu.core_type<tc>, window_params = [{transform_indices = @transform_0, window_bounds = array<i64: 8, 128>}, {pipeline_mode = #tpu.pipeline_mode<synchronous>, transform_indices = @transform_1, window_bounds = array<i64: 1, 128>}, {pipeline_mode = #tpu.pipeline_mode<synchronous>, transform_indices = @transform_2, window_bounds = array<i64: 1, 128>}, {pipeline_mode = #tpu.pipeline_mode<synchronous>, transform_indices = @transform_3, window_bounds = array<i64: 128, 128>}, {pipeline_mode = #tpu.pipeline_mode<synchronous>, transform_indices = @transform_4, window_bounds = array<i64: 1, 128>}, {transform_indices = @transform_5, window_bounds = array<i64: 8, 128>}]} {
    %c0 = arith.constant 0 : index
    %c0_0 = arith.constant 0 : index
    %0 = vector.load %arg2[%c0, %c0_0] : memref<8x128xf32, #tpu.memory_space<vmem>>, vector<8x128xf32>
    %cst = arith.constant dense<0.000000e+00> : vector<8xf32>
    %1 = vector.multi_reduction <add>, %0, %cst [1] : vector<8x128xf32> to vector<8xf32>
    %2 = vector.shape_cast %1 : vector<8xf32> to vector<8x1xf32>
    %3 = arith.mulf %0, %0 : vector<8x128xf32>
    %cst_1 = arith.constant dense<0.000000e+00> : vector<8xf32>
    %4 = vector.multi_reduction <add>, %3, %cst_1 [1] : vector<8x128xf32> to vector<8xf32>
    %5 = vector.shape_cast %4 : vector<8xf32> to vector<8x1xf32>
    %cst_2 = arith.constant 3.125000e-02 : f32
    %6 = vector.broadcast %cst_2 : f32 to vector<8x1xf32>
    %7 = arith.mulf %2, %6 : vector<8x1xf32>
    %8 = arith.mulf %2, %7 : vector<8x1xf32>
    %9 = arith.subf %5, %8 : vector<8x1xf32>
    %cst_3 = arith.constant 0.000000e+00 : f32
    %10 = vector.broadcast %cst_3 : f32 to vector<8x1xf32>
    %11 = arith.maximumf %9, %10 : vector<8x1xf32>
    %cst_4 = arith.constant 0.0322580636 : f32
    %12 = vector.broadcast %cst_4 : f32 to vector<8x1xf32>
    %13 = arith.mulf %11, %12 : vector<8x1xf32>
    %14 = math.sqrt %13 : vector<8x1xf32>
    %cst_5 = arith.constant 9.99999997E-7 : f32
    %15 = vector.broadcast %cst_5 : f32 to vector<8x1xf32>
    %16 = arith.addf %14, %15 : vector<8x1xf32>
    %17 = tpu.reciprocal %16 {approx = true} : vector<8x1xf32> -> vector<8x1xf32>
    %c0_6 = arith.constant 0 : index
    %c0_7 = arith.constant 0 : index
    %18 = vector.load %arg3[%c0_6, %c0_7] : memref<1x128xf32, #tpu.memory_space<vmem>>, vector<1x128xf32>
    %c0_8 = arith.constant 0 : index
    %c0_9 = arith.constant 0 : index
    %19 = vector.load %arg4[%c0_8, %c0_9] : memref<1x128xf32, #tpu.memory_space<vmem>>, vector<1x128xf32>
    %20 = vector.broadcast %7 : vector<8x1xf32> to vector<8x128xf32>
    %21 = arith.subf %0, %20 : vector<8x128xf32>
    %22 = vector.broadcast %18 : vector<1x128xf32> to vector<8x128xf32>
    %23 = vector.broadcast %17 : vector<8x1xf32> to vector<8x128xf32>
    %24 = arith.mulf %22, %23 : vector<8x128xf32>
    %25 = arith.mulf %21, %24 : vector<8x128xf32>
    %26 = vector.broadcast %19 : vector<1x128xf32> to vector<8x128xf32>
    %27 = arith.addf %25, %26 : vector<8x128xf32>
    %28 = arith.truncf %27 : vector<8x128xf32> to vector<8x128xbf16>
    %c0_10 = arith.constant 0 : index
    %c0_11 = arith.constant 0 : index
    %29 = vector.load %arg8[%c0_10, %c0_11] : memref<8x128xbf16, #tpu.memory_space<vmem>>, vector<8x128xbf16>
    tpu.vector_store %arg8[%c0_10, %c0_11], %28 {strides = array<i32>} : memref<8x128xbf16, #tpu.memory_space<vmem>>, vector<8x128xbf16>,
    %c0_12 = arith.constant 0 : index
    %c0_13 = arith.constant 0 : index
    %30 = vector.load %arg2[%c0_12, %c0_13] : memref<8x128xf32, #tpu.memory_space<vmem>>, vector<8x128xf32>
    %c0_14 = arith.constant 0 : index
    %c0_15 = arith.constant 0 : index
    %31 = vector.load %arg6[%c0_14, %c0_15] : memref<1x128xf32, #tpu.memory_space<vmem>>, vector<1x128xf32>
    %c0_16 = arith.constant 0 : index
    %c0_17 = arith.constant 0 : index
    %32 = vector.load %arg8[%c0_16, %c0_17] : memref<8x128xbf16, #tpu.memory_space<vmem>>, vector<8x128xbf16>
    %c0_18 = arith.constant 0 : index
    %c0_19 = arith.constant 0 : index
    %33 = vector.load %arg5[%c0_18, %c0_19] : memref<128x128xbf16, #tpu.memory_space<vmem>>, vector<128x128xbf16>
    %cst_20 = arith.constant dense<0.000000e+00> : vector<8x128xf32>
    %34 = tpu.matmul %32, %33, %cst_20 {dimension_numbers = #tpu.dot_dimension_numbers<[1], [0], [0], [1], [0, 0, 1, 1], [], []>} : vector<8x128xbf16>, vector<128x128xbf16>, vector<8x128xf32> -> vector<8x128xf32>
    %35 = arith.addf %30, %34 : vector<8x128xf32>
    %36 = vector.broadcast %31 : vector<1x128xf32> to vector<8x128xf32>
    %37 = arith.addf %35, %36 : vector<8x128xf32>
    %c0_21 = arith.constant 0 : index
    %c0_22 = arith.constant 0 : index
    %38 = vector.load %arg7[%c0_21, %c0_22] : memref<8x128xf32, #tpu.memory_space<vmem>>, vector<8x128xf32>
    tpu.vector_store %arg7[%c0_21, %c0_22], %37 {strides = array<i32>} : memref<8x128xf32, #tpu.memory_space<vmem>>, vector<8x128xf32>,
    return
  }
  func.func @transform_0(%arg0: i32, %arg1: i32) -> (i32, i32) {
    %c0_i32 = arith.constant 0 : i32
    %c0_i32_0 = arith.constant 0 : i32
    return %arg0, %c0_i32 : i32, i32
  }
  func.func @transform_1(%arg0: i32, %arg1: i32) -> (i32, i32) {
    %c0_i32 = arith.constant 0 : i32
    %c0_i32_0 = arith.constant 0 : i32
    %c0_i32_1 = arith.constant 0 : i32
    return %c0_i32, %c0_i32_0 : i32, i32
  }
  func.func @transform_2(%arg0: i32, %arg1: i32) -> (i32, i32) {
    %c0_i32 = arith.constant 0 : i32
    %c0_i32_0 = arith.constant 0 : i32
    %c0_i32_1 = arith.constant 0 : i32
    return %c0_i32, %c0_i32_0 : i32, i32
  }
  func.func @transform_3(%arg0: i32, %arg1: i32) -> (i32, i32) {
    %c0_i32 = arith.constant 0 : i32
    %c0_i32_0 = arith.constant 0 : i32
    %c0_i32_1 = arith.constant 0 : i32
    return %c0_i32, %c0_i32_0 : i32, i32
  }
  func.func @transform_4(%arg0: i32, %arg1: i32) -> (i32, i32) {
    %c0_i32 = arith.constant 0 : i32
    %c0_i32_0 = arith.constant 0 : i32
    %c0_i32_1 = arith.constant 0 : i32
    return %c0_i32, %c0_i32_0 : i32, i32
  }
  func.func @transform_5(%arg0: i32, %arg1: i32) -> (i32, i32) {
    %c0_i32 = arith.constant 0 : i32
    return %arg0, %arg1 : i32, i32
  }
}

</mosaic_0001>

<bundles_post_ra>
// kernel: sublayer_connection.1
= control target key start
LH: loop header
LB: loop body
LE: loop exit
PB: predicated region body
PF: predicated region fallthrough
CT: control target
= control target key end

     0   :  { %s611_s18 = smov 0   ;;  %s613_s19 = smov 0   ;;  %s684_s0 = inlined_call_operand.vmem [shape: f32[16,128], index: 0, kind: input, shape index: {}]   ;;  %s685_s1 = inlined_call_operand.vmem [shape: f32[1,128], index: 1, kind: input, shape index: {}]   ;;  %s686_s2 = inlined_call_operand.vmem [shape: f32[1,128], index: 2, kind: input, shape index: {}]   ;;  %s687_s3 = inlined_call_operand.vmem [shape: bf16[128,128], index: 3, kind: input, shape index: {}]   ;;  %s688_s4 = inlined_call_operand.vmem [shape: f32[1,128], index: 4, kind: input, shape index: {}]   ;;  %s689_s5 = inlined_call_operand.vmem [shape: f32[16,128], index: 5, kind: output, shape index: {}]  }
   0x1   :  { %s615_s20 = smov 0  }
   0x2 LB: > { %s27_s21 = sadd.s32 1, %s573_s19  ;;  %p472_p0 = scmp.ge.s32.totalorder %s577_s20, 1  ;;  %s577_s20 = sphi %s615_s20, %s15_s20   ;;  %s573_s19 = sphi %s613_s19, %s691_s19   ;;  %s569_s18 = sphi %s611_s18, %s690_s18  }
   0x3   : > { %p29_p1 = scmp.ge.s32.totalorder %s27_s21, 2  ;;  %p200_p2 = scmp.lt.s32.totalorder %s577_s20, 3 }
   0x5   : > { %s693_s21 = smov (%p29_p1, %s27_s21), 0  ;;  %p201_p3 = pnand %p472_p0, %p200_p2 }
   0x6   : > { %p229_p4 = scmp.lt.s32.totalorder (!%p201_p3), %s569_s18, 1 }
   0x7   : > { %204 = sbr.rel (%p201_p3) target bundleno = 413 (0x19d), region = 40 }
   0xc   : > { %s695_s18 = smov (!%p229_p4, %s569_s18), 1  ;;  %v543_v2 = vld [vmem:[%s687_s3 + $0x38] sm:$0xff]   ;;  %v579_v3 = vmov 0.0   ;;  %v544_v4 = vld [vmem:[%s687_s3 + $0x30] sm:$0xff]   ;;  %v545_v5 = vld [vmem:[%s687_s3 + $0x28] sm:$0xff]   ;;  %vm580_vm0 = vmmov 0  }
   0xd   : > { %s473_s22 = sshll.u32 %s695_s18, 3  ;;  %497 = vmatprep.subr.bf16.mxu0 %v579_v3  ;;  %v546_v6 = vld [vmem:[%s687_s3 + $0x20] sm:$0xff]   ;;  %v547_v7 = vld [vmem:[%s687_s3 + $0x18] sm:$0xff]   ;;  %v548_v8 = vld [vmem:[%s687_s3 + $0x10] sm:$0xff]   ;;  %513 = vmatprep.mubr.msk.bf16.mxu0 %vm580_vm0, %v579_v3 }
   0xe   : > { %s232_s25 = scalar_lea.vmem %s684_s0, %s473_s22  ;;  %498 = vmatpush3.bf16.msra.mxu0 %v543_v2  ;;  %v549_v9 = vld [vmem:[%s687_s3 + $0x8] sm:$0xff]   ;;  %v550_v10 = vld [vmem:[%s687_s3] sm:$0xff]   ;;  %s239_s30 = scalar_lea.vmem %s689_s5, %s473_s22 }
   0xf   : > { %v241_v0 = vld [vmem:[%s232_s25] sm:$0xff]  ;;  %499 = vmatprep.subr.bf16.mxu0 %v579_v3 }
  0x10   : > { %242 = vadd.xlane.f32.xlu0 %v241_v0  ;;  %v244_v1 = vmul.f32 %v241_v0, %v241_v0  ;;  %v475_v24 = vld [vmem:[%s685_s1] ss:$0 sm:$0xff] }
  0x11   : > { %v476_v28 = vld [vmem:[%s686_s2] ss:$0 sm:$0xff] }
  0x12   : > { %500 = vmatpush3.bf16.msra.mxu0 %v544_v4  ;;  %v485_v33 = vld [vmem:[%s688_s4] ss:$0 sm:$0xff] }
  0x13   : > { %501 = vmatprep.subr.bf16.mxu0 %v579_v3 }
  0x14   : > { %245 = vadd.xlane.f32.xlu0 %v244_v1 }
  0x16   : > { %502 = vmatpush3.bf16.msra.mxu0 %v545_v5 }
  0x17   : > { %503 = vmatprep.subr.bf16.mxu0 %v579_v3 }
  0x1a   : > { %504 = vmatpush3.bf16.msra.mxu0 %v546_v6 }
  0x1b   : > { %505 = vmatprep.subr.bf16.mxu0 %v579_v3 }
  0x1e   : > { %506 = vmatpush3.bf16.msra.mxu0 %v547_v7 }
  0x1f   : > { %507 = vmatprep.subr.bf16.mxu0 %v579_v3 }
  0x22   : > { %508 = vmatpush3.bf16.msra.mxu0 %v548_v8 }
  0x23   : > { %509 = vmatprep.subr.bf16.mxu0 %v579_v3 }
  0x26   : > { %510 = vmatpush3.bf16.msra.mxu0 %v549_v9 }
  0x27   : > { %511 = vmatprep.subr.bf16.mxu0 %v579_v3 }
  0x2a   : > { %512 = vmatpush3.bf16.msra.mxu0 %v550_v10 }
  0x99   : > { %v243_v11 = vpop.xlane.xlu0 %242 }
  0x9a   : > { %v247_v12 = vmul.f32 0.03125, %v243_v11 }
  0x9c   : > { %v248_v13 = vmul.f32 %v247_v12, %v243_v11  ;;  %v263_v26 = vsub.f32 %v241_v0, %v247_v12 }
  0x9d   : > { %v246_v14 = vpop.xlane.xlu0 %245 }
  0x9e   : > { %v249_v15 = vsub.f32 %v246_v14, %v248_v13 }
  0xa0   : > { %v250_v16 = vmax.f32 %v249_v15, 0.0 }
  0xa2   : > { %v251_v17 = vmul.f32 0.032258064, %v250_v16 }
  0xa4   : > { %551 = vrsqrt.f32 %v251_v17  ;;  %vm254_vm1 = vcmp.eq.f32.partialorder %v251_v17, inf  ;;  %v257_v20 = vand.u32 2147483648, %v251_v17  ;;  %vm256_vm2 = vcmp.eq.f32.partialorder %v251_v17, 0.0 }
  0xb1   : > { %v552_v18 = vpop.eup %551 }
  0xb2   : > { %v253_v19 = vmul.f32 %v552_v18, %v251_v17 }
  0xb4   : > { %v255_v21 = vsel %vm254_vm1, %v251_v17, %v253_v19 }
  0xb5   : > { %v258_v22 = vsel %vm256_vm2, %v257_v20, %v255_v21 }
  0xb6   : > { %v259_v23 = vadd.f32 1e-06, %v258_v22 }
  0xb8   : > { %553 = vrcp.f32 %v259_v23 }
  0xc5   : > { %v554_v25 = vpop.eup %553 }
  0xc6   : > { %v270_v27 = vmul.f32 %v554_v25, %v475_v24 }
  0xc8   : > { %v271_v29 = vmul.f32 %v270_v27, %v263_v26 }
  0xca   : > { %v278_v30 = vadd.f32 %v476_v28, %v271_v29 }
  0xcc   : > { %v279_v31 = vpack.c.bf16 %v278_v30, %v278_v30 }
  0xce   : > { %280 = vst [vmem:[#allocation2] sm:$0xf] %v279_v31 }
  0xd5   : > { %v283_v32 = vld [vmem:[#allocation2] sm:$0xf] }
  0xd6   : > { %514 = vmatmul.mubr.bf16.vlgmr.msra.gmra.mxu0 %v283_v32 }
 0x196   : > { %v382_v34 = vpop.f32.mrf.mxu0 }
 0x197   : > { %v388_v35 = vadd.f32 %v382_v34, %v241_v0 }
 0x198   : > { %v515_v36 = vpop.f32.mrf.mxu0 }
 0x199   : > { %v395_v37 = vadd.f32 %v485_v33, %v388_v35 }
 0x19a   : > { %v385_v38 = vpop.f32.mrf.mxu0 }
 0x19b   : > { %396 = vst [vmem:[%s239_s30] sm:$0xff] %v395_v37 }
 0x19c   : > { %v516_v39 = vpop.f32.mrf.mxu0 }
 0x19d PF: > { %s15_s20 = sadd.s32 1, %s577_s20   ;;  %s690_s18 = smov %s573_s19 }
 0x19e   : > { %p12_p5 = scmp.ge.s32.totalorder %s15_s20, 4   ;;  %s691_s19 = smov %s693_s21 }
 0x1a0   :  { %14 = sbr.rel (!%p12_p5) target bundleno = 2 (0x2), region = 70 }

</bundles_post_ra>
